<compile_context>
chip_gen: v6e
topology: v6e:2x2x1
jax: 0.10.0
libtpu: 0.0.40
codegen_flags: <defaults>
</compile_context>

<pallas_src>
import math
from functools import reduce

import jax
import jax.numpy as jnp
from jax.experimental import pallas as pl
from jax.experimental.pallas import tpu as pltpu


def _round_up(a: int, m: int) -> int:
    return (a + m - 1) // m * m


# ----------------------------- Pallas kernel ------------------------------- #
def _linear_kernel(x_ref, w_ref, b_ref, o_ref, acc_ref):
    # Grid: (batch tiles, N tiles, K tiles); K is the reduction axis (last).
    @pl.when(pl.program_id(2) == 0)
    def _init():
        acc_ref[...] = jnp.zeros_like(acc_ref)

    # bf16 x bf16 -> f32 accumulation on the MXU.
    acc_ref[...] += jnp.dot(
        x_ref[...], w_ref[...], preferred_element_type=jnp.float32
    )

    @pl.when(pl.program_id(2) == pl.num_programs(2) - 1)
    def _finalize():
        o_ref[...] = (acc_ref[...] + b_ref[...]).astype(o_ref.dtype)


def pallas_linear_padded(x_pad, w_t_pad, b_pad, *, tb, tn, tk, out_dtype):
    """x_pad: (Bp, Kp), w_t_pad: (Kp, Np), b_pad: (1, Np) -> (Bp, Np).

    All padded dims must be divisible by their tile sizes; tn/tk are multiples
    of 128 (or equal the full padded dim), tb a multiple of 8.
    """
    Bp, Kp = x_pad.shape
    _, Np = w_t_pad.shape
    grid = (Bp // tb, Np // tn, Kp // tk)

    flops = 2 * Bp * Kp * Np
    bytes_accessed = (
        Bp * Kp * jnp.dtype(x_pad.dtype).itemsize
        + Kp * Np * jnp.dtype(w_t_pad.dtype).itemsize
        + Np * 4
        + Bp * Np * jnp.dtype(out_dtype).itemsize
    )

    return pl.pallas_call(
        _linear_kernel,
        out_shape=jax.ShapeDtypeStruct((Bp, Np), out_dtype),
        grid_spec=pltpu.PrefetchScalarGridSpec(
            num_scalar_prefetch=0,
            grid=grid,
            in_specs=[
                pl.BlockSpec((tb, tk), lambda i, j, k: (i, k)),  # x tile
                pl.BlockSpec((tk, tn), lambda i, j, k: (k, j)),  # weight tile
                pl.BlockSpec((1, tn), lambda i, j, k: (0, j)),   # bias tile
            ],
            out_specs=pl.BlockSpec((tb, tn), lambda i, j, k: (i, j)),
            scratch_shapes=[pltpu.VMEM((tb, tn), jnp.float32)],
        ),
        compiler_params=pltpu.CompilerParams(
            dimension_semantics=("parallel", "parallel", "arbitrary"),
            vmem_limit_bytes=32 * 1024 * 1024,
        ),
        cost_estimate=pl.CostEstimate(
            flops=flops, transcendentals=0, bytes_accessed=bytes_accessed
        ),
    )(x_pad, w_t_pad, b_pad)


# ------------------------ ConceptEncoder (JAX port) ------------------------ #
def validate_and_generate_concept_names(out_concept_dimensions):
    concept_names = {0: []}  # batch dim stays empty
    for dim, val in out_concept_dimensions.items():
        if isinstance(val, int):
            concept_names[dim] = [f"concept_{dim}_{i}" for i in range(val)]
        else:
            concept_names[dim] = list(val)
    return concept_names


def compute_output_size(concept_names):
    sizes = [len(v) for d, v in concept_names.items() if d != 0]
    return reduce(lambda a, b: a * b, sizes, 1)


class ConceptEncoder:
    def __init__(self, in_features, out_concept_dimensions, reduce_dim=None,
                 key=jax.random.PRNGKey(0), compute_dtype=jnp.bfloat16):
        self.concept_names = validate_and_generate_concept_names(
            out_concept_dimensions)
        self.output_size = compute_output_size(self.concept_names)
        self.in_features = in_features
        self.reduce_dim = reduce_dim
        if reduce_dim is not None:
            # TODO(synk): mirrors the torch code (Linear -> 1 output); no actual
            # reduction over a concept dimension is performed by the reference
            # module either.
            self.output_size = 1
        self._compute_dtype = compute_dtype
        # TODO(synk): on v6e the weight could additionally be int8-quantized and
        # on v7x fp8-quantized; bf16 is the portable default used here.

        self._concept_shape = tuple(
            len(self.concept_names[d])
            for d in sorted(self.concept_names.keys()) if d != 0
        )

        # Deterministic init mimicking nn.Linear defaults
        # (U(-1/sqrt(fan_in), 1/sqrt(fan_in))).
        kw, kb = jax.random.split(key)
        bound = 1.0 / math.sqrt(in_features)
        # PyTorch weight shape: (output_size, in_features)
        self.weight = jax.random.uniform(
            kw, (self.output_size, in_features), jnp.float32, -bound, bound)
        self.bias = jax.random.uniform(
            kb, (self.output_size,), jnp.float32, -bound, bound)

        # Static tile sizes / padded dims (lane-dense N, 128-aligned K tiles).
        K, N = in_features, self.output_size
        Kp0 = _round_up(K, 128)
        self._tk = min(512, Kp0)
        self._Kp = _round_up(K, self._tk)
        Np0 = _round_up(N, 128)
        self._tn = min(256, Np0)
        self._Np = _round_up(N, self._tn)

        # Precompute transposed, zero-padded, bf16 weight and padded f32 bias
        # once (no per-call weight.T transpose / pad).
        w_t = self.weight.T  # (K, N)
        self._w_t_pad = (
            jnp.zeros((self._Kp, self._Np), self._compute_dtype)
            .at[:K, :N].set(w_t.astype(self._compute_dtype))
        )
        self._b_pad = (
            jnp.zeros((1, self._Np), jnp.float32).at[0, :N].set(self.bias)
        )

        self._forward_jit = jax.jit(self._forward)

    def _forward(self, x, w_t_pad, b_pad):
        B, K = x.shape
        tb = min(256, _round_up(B, 8))
        Bp = _round_up(B, tb)

        xc = x.astype(self._compute_dtype)
        if Bp != B or self._Kp != K:
            x_pad = (
                jnp.zeros((Bp, self._Kp), self._compute_dtype)
                .at[:B, :K].set(xc)
            )
        else:
            x_pad = xc

        out_pad = pallas_linear_padded(
            x_pad, w_t_pad, b_pad,
            tb=tb, tn=self._tn, tk=self._tk, out_dtype=x.dtype)

        emb = out_pad[:B, :self.output_size]
        return emb.reshape((-1,) + self._concept_shape)

    def __call__(self, x):
        return self._forward_jit(x, self._w_t_pad, self._b_pad)


# --------------------------------- main ------------------------------------ #
if __name__ == "__main__":
    key = jax.random.PRNGKey(0)
    kx, kparams = jax.random.split(key)

    batch = 8
    in_features = 32
    out_concept_dimensions = {1: ["concept_a", "concept_b"], 2: 3}  # -> (2, 3)

    enc = ConceptEncoder(in_features, out_concept_dimensions, key=kparams)
    x = jax.random.normal(kx, (batch, in_features), jnp.float32)

    out = jax.block_until_ready(enc(x))
    assert out.shape == (batch, 2, 3), out.shape

    # Reference with the same numerics as the kernel (bf16 operands, f32 accum).
    xb = x.astype(jnp.bfloat16).astype(jnp.float32)
    wb = enc.weight.astype(jnp.bfloat16).astype(jnp.float32)
    ref = (xb @ wb.T + enc.bias).reshape(batch, 2, 3)
    assert jnp.allclose(out, ref, atol=1e-3, rtol=1e-3), "mismatch vs reference"

    print("KERNEL_OK")
</pallas_src>

<mosaic_0001>
module attributes {stable_mosaic.version = 11 : i64} {
  func.func @_linear_kernel(%arg0: i32, %arg1: i32, %arg2: i32, %arg3: memref<8x128xbf16, #tpu.memory_space<vmem>>, %arg4: memref<128x128xbf16, #tpu.memory_space<vmem>>, %arg5: memref<1x128xf32, #tpu.memory_space<vmem>>, %arg6: memref<8x128xf32, #tpu.memory_space<vmem>>, %arg7: memref<8x128xf32, #tpu.memory_space<vmem>>) attributes {dimension_semantics = [#tpu.dimension_semantics<parallel>, #tpu.dimension_semantics<parallel>, #tpu.dimension_semantics<arbitrary>], iteration_bounds = array<i64: 1, 1, 1>, scalar_prefetch = 0 : i64, scratch_operands = 1 : i64, tpu.core_type = #tpu.core_type<tc>, window_params = [{transform_indices = @transform_0, window_bounds = array<i64: 8, 128>}, {transform_indices = @transform_1, window_bounds = array<i64: 128, 128>}, {transform_indices = @transform_2, window_bounds = array<i64: 1, 128>}, {transform_indices = @transform_3, window_bounds = array<i64: 8, 128>}]} {
    %c0_i32 = arith.constant 0 : i32
    %0 = arith.cmpi eq, %arg2, %c0_i32 : i32
    %1 = arith.extui %0 : i1 to i32
    %c0_i32_0 = arith.constant 0 : i32
    %2 = arith.cmpi ne, %1, %c0_i32_0 : i32
    scf.if %2 {
      %cst_10 = arith.constant 0.000000e+00 : f32
      %12 = vector.broadcast %cst_10 : f32 to vector<8x128xf32>
      %c0_11 = arith.constant 0 : index
      %c0_12 = arith.constant 0 : index
      %13 = vector.load %arg7[%c0_11, %c0_12] : memref<8x128xf32, #tpu.memory_space<vmem>>, vector<8x128xf32>
      tpu.vector_store %arg7[%c0_11, %c0_12], %12 {strides = array<i32>} : memref<8x128xf32, #tpu.memory_space<vmem>>, vector<8x128xf32>,
    } else {
    }
    %c0 = arith.constant 0 : index
    %c0_1 = arith.constant 0 : index
    %3 = vector.load %arg7[%c0, %c0_1] : memref<8x128xf32, #tpu.memory_space<vmem>>, vector<8x128xf32>
    %c0_2 = arith.constant 0 : index
    %c0_3 = arith.constant 0 : index
    %4 = vector.load %arg3[%c0_2, %c0_3] : memref<8x128xbf16, #tpu.memory_space<vmem>>, vector<8x128xbf16>
    %c0_4 = arith.constant 0 : index
    %c0_5 = arith.constant 0 : index
    %5 = vector.load %arg4[%c0_4, %c0_5] : memref<128x128xbf16, #tpu.memory_space<vmem>>, vector<128x128xbf16>
    %cst = arith.constant dense<0.000000e+00> : vector<8x128xf32>
    %6 = tpu.matmul %4, %5, %cst {dimension_numbers = #tpu.dot_dimension_numbers<[1], [0], [0], [1], [0, 0, 1, 1], [], []>} : vector<8x128xbf16>, vector<128x128xbf16>, vector<8x128xf32> -> vector<8x128xf32>
    %7 = arith.addf %3, %6 : vector<8x128xf32>
    %c0_6 = arith.constant 0 : index
    %c0_7 = arith.constant 0 : index
    %8 = vector.load %arg7[%c0_6, %c0_7] : memref<8x128xf32, #tpu.memory_space<vmem>>, vector<8x128xf32>
    tpu.vector_store %arg7[%c0_6, %c0_7], %7 {strides = array<i32>} : memref<8x128xf32, #tpu.memory_space<vmem>>, vector<8x128xf32>,
    %c0_i32_8 = arith.constant 0 : i32
    %9 = arith.cmpi eq, %arg2, %c0_i32_8 : i32
    %10 = arith.extui %9 : i1 to i32
    %c0_i32_9 = arith.constant 0 : i32
    %11 = arith.cmpi ne, %10, %c0_i32_9 : i32
    scf.if %11 {
      %c0_10 = arith.constant 0 : index
      %c0_11 = arith.constant 0 : index
      %12 = vector.load %arg7[%c0_10, %c0_11] : memref<8x128xf32, #tpu.memory_space<vmem>>, vector<8x128xf32>
      %c0_12 = arith.constant 0 : index
      %c0_13 = arith.constant 0 : index
      %13 = vector.load %arg5[%c0_12, %c0_13] : memref<1x128xf32, #tpu.memory_space<vmem>>, vector<1x128xf32>
      %14 = vector.broadcast %13 : vector<1x128xf32> to vector<8x128xf32>
      %15 = arith.addf %12, %14 : vector<8x128xf32>
      %c0_14 = arith.constant 0 : index
      %c0_15 = arith.constant 0 : index
      %16 = vector.load %arg6[%c0_14, %c0_15] : memref<8x128xf32, #tpu.memory_space<vmem>>, vector<8x128xf32>
      tpu.vector_store %arg6[%c0_14, %c0_15], %15 {strides = array<i32>} : memref<8x128xf32, #tpu.memory_space<vmem>>, vector<8x128xf32>,
    } else {
    }
    return
  }
  func.func @transform_0(%arg0: i32, %arg1: i32, %arg2: i32) -> (i32, i32) {
    %c0_i32 = arith.constant 0 : i32
    return %arg0, %arg2 : i32, i32
  }
  func.func @transform_1(%arg0: i32, %arg1: i32, %arg2: i32) -> (i32, i32) {
    %c0_i32 = arith.constant 0 : i32
    return %arg2, %arg1 : i32, i32
  }
  func.func @transform_2(%arg0: i32, %arg1: i32, %arg2: i32) -> (i32, i32) {
    %c0_i32 = arith.constant 0 : i32
    %c0_i32_0 = arith.constant 0 : i32
    return %c0_i32, %arg1 : i32, i32
  }
  func.func @transform_3(%arg0: i32, %arg1: i32, %arg2: i32) -> (i32, i32) {
    %c0_i32 = arith.constant 0 : i32
    return %arg0, %arg1 : i32, i32
  }
}

</mosaic_0001>

<bundles_post_ra>
// kernel: _forward.1
= control target key start
LH: loop header
LB: loop body
LE: loop exit
PB: predicated region body
PF: predicated region fallthrough
CT: control target
= control target key end

     0   :  { %8 = vsyncpa [#allocation4], 0  ;;  %s233_s12 = smov [#allocation3]   ;;  %s270_s0 = inlined_call_operand.vmem [shape: bf16[8,128], index: 0, kind: input, shape index: {}]   ;;  %s271_s1 = inlined_call_operand.hbm [shape: bf16[128,128], index: 1, kind: input, shape index: {}]   ;;  %s272_s2 = inlined_call_operand.vmem [shape: f32[1,128], index: 2, kind: input, shape index: {}]   ;;  %s273_s3 = inlined_call_operand.vmem [shape: f32[8,128], index: 3, kind: output, shape index: {}]  }
   0x1   :  { %s16_s13 = sshll.u32 %s233_s12, 4  ;;  %s17_s13 = int_to_ptr.vmem [resolvable:$true] %s16_s13 }
   0x2   :  { %s219_s14 = scalar_lea.vmem %s17_s13, 1024  ;;  %p224_p1 = scmp.lt.s32.totalorder %s17_s13, %s17_s13 }
   0x3   :  { %p220_p0 = scmp.ne.s32.totalorder %s17_s13, %s219_s14  ;;  %p225_p2 = scmp.lt.s32.totalorder %s219_s14, %s219_s14 }
   0x5   :  { %p226_p3 = por %p225_p2, %p224_p1 }
   0x7   :  { %p227_p4 = pnand %p226_p3, %p220_p0 }
   0x9   :  { %230 = shalt.err (!%p227_p4)
}
   0xa   :  { %s234_s15 = smov 64   ;;  %s235_s16 = smov 4  }
   0xb   :  { %22 = dma.hbm_to_vmem [thread:$0]  %s271_s1, 1024, %s17_s13, [#allocation4], %s234_s15, %s234_s15, %s235_s16  }
   0xc   :  { %231 = dma.done.wait [#allocation4], 1024  }
   0xd   :  { %232 = vsyncadd [#allocation4], 4294966272  ;;  %v236_v0 = vmov 0.0   ;;  %vm237_vm0 = vmmov 0   ;;  %v203_v1 = vld [vmem:[#allocation3 + $0x38] sm:$0xff]   ;;  %v204_v2 = vld [vmem:[#allocation3 + $0x30] sm:$0xff]  }
   0xe   :  { %178 = vmatprep.subr.bf16.mxu0 %v236_v0  ;;  %194 = vmatprep.mubr.msk.bf16.mxu0 %vm237_vm0, %v236_v0  ;;  %v205_v3 = vld [vmem:[#allocation3 + $0x28] sm:$0xff]   ;;  %v206_v4 = vld [vmem:[#allocation3 + $0x20] sm:$0xff]   ;;  %v207_v5 = vld [vmem:[#allocation3 + $0x18] sm:$0xff]  }
   0xf   :  { %179 = vmatpush3.bf16.msra.mxu0 %v203_v1  ;;  %v208_v6 = vld [vmem:[#allocation3 + $0x10] sm:$0xff]   ;;  %v209_v7 = vld [vmem:[#allocation3 + $0x8] sm:$0xff]   ;;  %v210_v8 = vld [vmem:[#allocation3] sm:$0xff]  }
  0x10   :  { %180 = vmatprep.subr.bf16.mxu0 %v236_v0  ;;  %v35_v9 = vld [vmem:[%s270_s0] sm:$0xf] }
  0x11   :  { %v168_v10 = vld [vmem:[%s272_s2] ss:$0 sm:$0xff] }
  0x13   :  { %181 = vmatpush3.bf16.msra.mxu0 %v204_v2 }
  0x14   :  { %182 = vmatprep.subr.bf16.mxu0 %v236_v0 }
  0x17   :  { %183 = vmatpush3.bf16.msra.mxu0 %v205_v3 }
  0x18   :  { %184 = vmatprep.subr.bf16.mxu0 %v236_v0 }
  0x1b   :  { %185 = vmatpush3.bf16.msra.mxu0 %v206_v4 }
  0x1c   :  { %186 = vmatprep.subr.bf16.mxu0 %v236_v0 }
  0x1f   :  { %187 = vmatpush3.bf16.msra.mxu0 %v207_v5 }
  0x20   :  { %188 = vmatprep.subr.bf16.mxu0 %v236_v0 }
  0x23   :  { %189 = vmatpush3.bf16.msra.mxu0 %v208_v6 }
  0x24   :  { %190 = vmatprep.subr.bf16.mxu0 %v236_v0 }
  0x27   :  { %191 = vmatpush3.bf16.msra.mxu0 %v209_v7 }
  0x28   :  { %192 = vmatprep.subr.bf16.mxu0 %v236_v0 }
  0x2b   :  { %193 = vmatpush3.bf16.msra.mxu0 %v210_v8 }
  0x2e   :  { %195 = vmatmul.mubr.bf16.vlgmr.msra.gmra.mxu0 %v35_v9 }
  0xee   :  { %v134_v11 = vpop.f32.mrf.mxu0 }
  0xef   :  { %v153_v12 = vadd.f32 %v168_v10, %v134_v11 }
  0xf0   :  { %v196_v13 = vpop.f32.mrf.mxu0 }
  0xf1   :  { %154 = vst [vmem:[%s273_s3] sm:$0xff] %v153_v12 }
  0xf2   :  { %v137_v14 = vpop.f32.mrf.mxu0 }
  0xf4   :  { %v197_v15 = vpop.f32.mrf.mxu0 }
  0xf5   :  { %159 = vsyncpa [#allocation4], 1 }

</bundles_post_ra>
